<compile_context>
chip_gen: v6e
topology: v6e:2x2x1
jax: 0.10.0
libtpu: 0.0.40
codegen_flags: <defaults>
</compile_context>

<pallas_src>
import functools

import jax
import jax.numpy as jnp
import numpy as np
from jax import lax
from jax.experimental import pallas as pl
from jax.experimental.pallas import tpu as pltpu


def _pick_band_rows(Ho, Wo):
    """Smallest divisor TH of Ho with TH*Wo a multiple of 128 (lane-dense),
    preferring bands big enough (>=1024 lanes) to amortize per-step overhead.
    Falls back to the full Ho (block == full dim is always legal)."""
    best = None
    for th in range(1, Ho + 1):
        if Ho % th:
            continue
        m = th * Wo
        if m % 128 == 0:
            if best is None:
                best = th
            if m >= 1024:
                return th
    return best if best is not None else Ho


def _dwsep_kernel(x_ref, w_ref, o_ref, xpad_ref, *, H, W, KH, KW, Ho, Wo, TH,
                  stride, dilation, padding):
    # x_ref:    (1, C, H, W)       one image, NCHW, unpadded
    # w_ref:    (KH*KW, Cout, C)   fused depthwise*pointwise weight, per tap
    # o_ref:    (1, Cout, TH*Wo)   lane-dense output band (TH*Wo % 128 == 0)
    # xpad_ref: (C, Hp, Wp)        VMEM scratch: zero-padded image; persists
    #                              across the band axis, rebuilt per image.
    C = x_ref.shape[1]
    Cout = w_ref.shape[1]
    Hp, Wp = H + 2 * padding, W + 2 * padding
    band = pl.program_id(1)

    @pl.when(band == 0)
    def _stage_image():
        # Zero only the border strips; the interior is overwritten below.
        if padding > 0:
            xpad_ref[:, 0:padding, :] = jnp.zeros((C, padding, Wp), jnp.float32)
            xpad_ref[:, padding + H:Hp, :] = jnp.zeros((C, padding, Wp),
                                                       jnp.float32)
            xpad_ref[:, padding:padding + H, 0:padding] = jnp.zeros(
                (C, H, padding), jnp.float32)
            xpad_ref[:, padding:padding + H, padding + W:Wp] = jnp.zeros(
                (C, H, padding), jnp.float32)
        xpad_ref[:, padding:padding + H, padding:padding + W] = (
            x_ref[0].astype(jnp.float32))

    w_all = w_ref[...].astype(jnp.float32)      # (KH*KW, Cout, C), resident
    row_base = band * (TH * stride)             # first padded row of this band

    # KH*KW accumulated MXU matmuls; f32 accumulation in registers.
    acc = jnp.zeros((Cout, TH * Wo), jnp.float32)
    for kh in range(KH):
        for kw in range(KW):
            t = kh * KW + kw
            r0 = row_base + kh * dilation
            c0 = kw * dilation
            if stride == 1:
                tap = xpad_ref[:, pl.ds(r0, TH), pl.ds(c0, Wo)]
            else:
                # Ref-level strided load (avoids value-level strided lane
                # slicing).  Not exercised by the shipped test.
                tap = xpad_ref[:, pl.ds(r0, TH, stride), pl.ds(c0, Wo, stride)]
            rhs = tap.reshape(C, TH * Wo)       # layout-free when Wo%128==0
            acc = acc + jnp.dot(w_all[t], rhs,
                                preferred_element_type=jnp.float32)

    o_ref[0] = acc.astype(o_ref.dtype)


def depthwise_separable_conv2d(x_nchw, dw_weight, pw_weight,
                               stride=1, padding=0, dilation=1):
    """Equivalent of DepthwiseConv2d.forward (bias=False).

    x_nchw:    (N, C, H, W)
    dw_weight: (C, 1, KH, KW)   -- PyTorch depthwise conv weight
    pw_weight: (Cout, C, 1, 1)  -- PyTorch pointwise conv weight
    returns:   (N, Cout, Ho, Wo)
    """
    N, C, H, W = x_nchw.shape
    KH, KW = int(dw_weight.shape[2]), int(dw_weight.shape[3])
    Cout = int(pw_weight.shape[0])
    Hp, Wp = H + 2 * padding, W + 2 * padding
    Ho = (Hp - dilation * (KH - 1) - 1) // stride + 1
    Wo = (Wp - dilation * (KW - 1) - 1) // stride + 1

    TH = _pick_band_rows(Ho, Wo)
    NB = Ho // TH

    # Fused weight: w_fused[kh*KW+kw, o, c] = dw[c,kh,kw] * pw[o,c]
    # (depthwise and pointwise are both linear -> exact fusion), built directly
    # in the layout the kernel consumes (no extra transpose).
    dw = dw_weight[:, 0, :, :]                      # (C, KH, KW)
    pw = pw_weight[:, :, 0, 0]                      # (Cout, C)
    w_fused = jnp.einsum('ckl,oc->kloc', dw, pw).reshape(KH * KW, Cout, C)
    w_fused = w_fused.astype(jnp.float32)

    kernel = functools.partial(_dwsep_kernel, H=H, W=W, KH=KH, KW=KW, Ho=Ho,
                               Wo=Wo, TH=TH, stride=stride, dilation=dilation,
                               padding=padding)

    out_flat = pl.pallas_call(
        kernel,
        out_shape=jax.ShapeDtypeStruct((N, Cout, Ho * Wo), x_nchw.dtype),
        grid=(N, NB),
        in_specs=[
            # Full image per batch element; block index ignores the band axis
            # so the tile stays resident across all bands of one image.
            pl.BlockSpec((1, C, H, W), lambda n, b: (n, 0, 0, 0)),
            # Fused weight, resident for the whole grid.
            pl.BlockSpec((KH * KW, Cout, C), lambda n, b: (0, 0, 0)),
        ],
        out_specs=pl.BlockSpec((1, Cout, TH * Wo), lambda n, b: (n, 0, b)),
        scratch_shapes=[pltpu.VMEM((C, Hp, Wp), jnp.float32)],
        compiler_params=pltpu.CompilerParams(
            dimension_semantics=("parallel", "arbitrary"),
            # Explicit scoped-VMEM budget (defaults are 16/32/32 MiB on
            # v5e/v6e/v7x).  Usage here is tiny; at production sizes size the
            # Ho band so double-buffered tiles stay within this budget.
            vmem_limit_bytes=32 * 1024 * 1024),
    )(x_nchw, w_fused)

    # Lane-dense (N, Cout, Ho*Wo) -> NCHW is a pure reshape (no transpose).
    return out_flat.reshape(N, Cout, Ho, Wo)


def _reference(x_nchw, dw_weight, pw_weight, stride, padding, dilation):
    # Pure-JAX reference via lax.conv_general_dilated (NCHW, OIHW).
    C = x_nchw.shape[1]
    dw_out = lax.conv_general_dilated(
        x_nchw, dw_weight, window_strides=(stride, stride),
        padding=((padding, padding), (padding, padding)),
        rhs_dilation=(dilation, dilation),
        dimension_numbers=("NCHW", "OIHW", "NCHW"),
        feature_group_count=C)
    return lax.conv_general_dilated(
        dw_out, pw_weight, window_strides=(1, 1), padding="VALID",
        dimension_numbers=("NCHW", "OIHW", "NCHW"))


if __name__ == "__main__":
    # Module config (deterministic, synthetic): in=4, out=8, kernel=3, pad=1
    in_channels, out_channels, kernel_size = 4, 8, 3
    stride, padding, dilation = 1, 1, 1

    key = jax.random.PRNGKey(0)
    kx, kdw, kpw = jax.random.split(key, 3)

    x = jax.random.normal(kx, (2, in_channels, 16, 16), dtype=jnp.float32)
    # PyTorch-shaped weights (bias=False): depthwise (C,1,KH,KW), pointwise (Cout,C,1,1)
    dw_weight = jax.random.normal(
        kdw, (in_channels, 1, kernel_size, kernel_size), dtype=jnp.float32) * 0.1
    pw_weight = jax.random.normal(
        kpw, (out_channels, in_channels, 1, 1), dtype=jnp.float32) * 0.1

    out = depthwise_separable_conv2d(x, dw_weight, pw_weight,
                                     stride=stride, padding=padding,
                                     dilation=dilation)
    out = jax.block_until_ready(out)

    ref = _reference(x, dw_weight, pw_weight, stride, padding, dilation)
    np.testing.assert_allclose(np.asarray(out), np.asarray(ref),
                               atol=1e-4, rtol=1e-4)

    print("KERNEL_OK")
</pallas_src>

<mosaic_0001>
module attributes {stable_mosaic.version = 11 : i64} {
  func.func @_dwsep_kernel(%arg0: i32, %arg1: i32, %arg2: memref<1x4x16x16xf32, #tpu.memory_space<vmem>>, %arg3: memref<9x8x4xf32, #tpu.memory_space<vmem>>, %arg4: memref<1x8x128xf32, #tpu.memory_space<vmem>>, %arg5: memref<4x18x18xf32, #tpu.memory_space<vmem>>) attributes {dimension_semantics = [#tpu.dimension_semantics<parallel>, #tpu.dimension_semantics<arbitrary>], iteration_bounds = array<i64: 2, 2>, scalar_prefetch = 0 : i64, scratch_operands = 1 : i64, tpu.core_type = #tpu.core_type<tc>, window_params = [{transform_indices = @transform_0, window_bounds = array<i64: 1, 4, 16, 16>}, {pipeline_mode = #tpu.pipeline_mode<synchronous>, transform_indices = @transform_1, window_bounds = array<i64: 9, 8, 4>}, {transform_indices = @transform_2, window_bounds = array<i64: 1, 8, 128>}]} {
    %c0_i32 = arith.constant 0 : i32
    %0 = arith.cmpi eq, %arg1, %c0_i32 : i32
    %1 = arith.extui %0 : i1 to i32
    %c0_i32_0 = arith.constant 0 : i32
    %2 = arith.cmpi ne, %1, %c0_i32_0 : i32
    scf.if %2 {
      %cst_38 = arith.constant 0.000000e+00 : f32
      %81 = vector.broadcast %cst_38 : f32 to vector<4x1x18xf32>
      %c0_39 = arith.constant 0 : index
      %c0_40 = arith.constant 0 : index
      %c0_41 = arith.constant 0 : index
      %82 = vector.load %arg5[%c0_39, %c0_40, %c0_41] : memref<4x18x18xf32, #tpu.memory_space<vmem>>, vector<4x1x18xf32>
      tpu.vector_store %arg5[%c0_39, %c0_40, %c0_41], %81 {strides = array<i32>} : memref<4x18x18xf32, #tpu.memory_space<vmem>>, vector<4x1x18xf32>,
      %cst_42 = arith.constant 0.000000e+00 : f32
      %83 = vector.broadcast %cst_42 : f32 to vector<4x1x18xf32>
      %c0_43 = arith.constant 0 : index
      %c17 = arith.constant 17 : index
      %c0_44 = arith.constant 0 : index
      %84 = vector.load %arg5[%c0_43, %c17, %c0_44] : memref<4x18x18xf32, #tpu.memory_space<vmem>>, vector<4x1x18xf32>
      tpu.vector_store %arg5[%c0_43, %c17, %c0_44], %83 {strides = array<i32>} : memref<4x18x18xf32, #tpu.memory_space<vmem>>, vector<4x1x18xf32>,
      %cst_45 = arith.constant 0.000000e+00 : f32
      %85 = vector.broadcast %cst_45 : f32 to vector<4x16x1xf32>
      %c0_46 = arith.constant 0 : index
      %c1_47 = arith.constant 1 : index
      %c0_48 = arith.constant 0 : index
      %86 = vector.load %arg5[%c0_46, %c1_47, %c0_48] : memref<4x18x18xf32, #tpu.memory_space<vmem>>, vector<4x16x1xf32>
      tpu.vector_store %arg5[%c0_46, %c1_47, %c0_48], %85 {strides = array<i32>} : memref<4x18x18xf32, #tpu.memory_space<vmem>>, vector<4x16x1xf32>,
      %cst_49 = arith.constant 0.000000e+00 : f32
      %87 = vector.broadcast %cst_49 : f32 to vector<4x16x1xf32>
      %c0_50 = arith.constant 0 : index
      %c1_51 = arith.constant 1 : index
      %c17_52 = arith.constant 17 : index
      %88 = vector.load %arg5[%c0_50, %c1_51, %c17_52] : memref<4x18x18xf32, #tpu.memory_space<vmem>>, vector<4x16x1xf32>
      tpu.vector_store %arg5[%c0_50, %c1_51, %c17_52], %87 {strides = array<i32>} : memref<4x18x18xf32, #tpu.memory_space<vmem>>, vector<4x16x1xf32>,
      %c0_53 = arith.constant 0 : index
      %c0_54 = arith.constant 0 : index
      %c0_55 = arith.constant 0 : index
      %c0_56 = arith.constant 0 : index
      %89 = vector.load %arg2[%c0_53, %c0_54, %c0_55, %c0_56] : memref<1x4x16x16xf32, #tpu.memory_space<vmem>>, vector<1x4x16x16xf32>
      %90 = vector.shape_cast %89 : vector<1x4x16x16xf32> to vector<4x16x16xf32>
      %c0_57 = arith.constant 0 : index
      %c1_58 = arith.constant 1 : index
      %c1_59 = arith.constant 1 : index
      %91 = vector.load %arg5[%c0_57, %c1_58, %c1_59] : memref<4x18x18xf32, #tpu.memory_space<vmem>>, vector<4x16x16xf32>
      tpu.vector_store %arg5[%c0_57, %c1_58, %c1_59], %90 {strides = array<i32>} : memref<4x18x18xf32, #tpu.memory_space<vmem>>, vector<4x16x16xf32>,
    } else {
    }
    %c0 = arith.constant 0 : index
    %c0_1 = arith.constant 0 : index
    %c0_2 = arith.constant 0 : index
    %3 = vector.load %arg3[%c0, %c0_1, %c0_2] : memref<9x8x4xf32, #tpu.memory_space<vmem>>, vector<9x8x4xf32>
    %c8_i32 = arith.constant 8 : i32
    %4 = arith.muli %arg1, %c8_i32 : i32
    %cst = arith.constant 0.000000e+00 : f32
    %5 = vector.broadcast %cst : f32 to vector<8x128xf32>
    %c0_i32_3 = arith.constant 0 : i32
    %6 = arith.addi %4, %c0_i32_3 : i32
    %c0_4 = arith.constant 0 : index
    %7 = arith.index_cast %6 : i32 to index
    %c0_5 = arith.constant 0 : index
    %8 = vector.load %arg5[%c0_4, %7, %c0_5] : memref<4x18x18xf32, #tpu.memory_space<vmem>>, vector<4x8x16xf32>
    %9 = vector.shape_cast %8 : vector<4x8x16xf32> to vector<4x128xf32>
    %10 = vector.extract_strided_slice %3 {offsets = [0, 0, 0], sizes = [1, 8, 4], strides = [1, 1, 1]} : vector<9x8x4xf32> to vector<1x8x4xf32>
    %11 = vector.shape_cast %10 : vector<1x8x4xf32> to vector<8x4xf32>
    %cst_6 = arith.constant dense<0.000000e+00> : vector<8x128xf32>
    %12 = tpu.matmul %11, %9, %cst_6 {dimension_numbers = #tpu.dot_dimension_numbers<[1], [0], [0], [1], [0, 0, 1, 1], [], []>} : vector<8x4xf32>, vector<4x128xf32>, vector<8x128xf32> -> vector<8x128xf32>
    %13 = arith.addf %5, %12 : vector<8x128xf32>
    %c0_i32_7 = arith.constant 0 : i32
    %14 = arith.addi %4, %c0_i32_7 : i32
    %c0_8 = arith.constant 0 : index
    %15 = arith.index_cast %14 : i32 to index
    %c1 = arith.constant 1 : index
    %16 = vector.load %arg5[%c0_8, %15, %c1] : memref<4x18x18xf32, #tpu.memory_space<vmem>>, vector<4x8x16xf32>
    %17 = vector.shape_cast %16 : vector<4x8x16xf32> to vector<4x128xf32>
    %18 = vector.extract_strided_slice %3 {offsets = [1, 0, 0], sizes = [1, 8, 4], strides = [1, 1, 1]} : vector<9x8x4xf32> to vector<1x8x4xf32>
    %19 = vector.shape_cast %18 : vector<1x8x4xf32> to vector<8x4xf32>
    %cst_9 = arith.constant dense<0.000000e+00> : vector<8x128xf32>
    %20 = tpu.matmul %19, %17, %cst_9 {dimension_numbers = #tpu.dot_dimension_numbers<[1], [0], [0], [1], [0, 0, 1, 1], [], []>} : vector<8x4xf32>, vector<4x128xf32>, vector<8x128xf32> -> vector<8x128xf32>
    %21 = arith.addf %13, %20 : vector<8x128xf32>
    %c0_i32_10 = arith.constant 0 : i32
    %22 = arith.addi %4, %c0_i32_10 : i32
    %c0_11 = arith.constant 0 : index
    %23 = arith.index_cast %22 : i32 to index
    %c2 = arith.constant 2 : index
    %24 = vector.load %arg5[%c0_11, %23, %c2] : memref<4x18x18xf32, #tpu.memory_space<vmem>>, vector<4x8x16xf32>
    %25 = vector.shape_cast %24 : vector<4x8x16xf32> to vector<4x128xf32>
    %26 = vector.extract_strided_slice %3 {offsets = [2, 0, 0], sizes = [1, 8, 4], strides = [1, 1, 1]} : vector<9x8x4xf32> to vector<1x8x4xf32>
    %27 = vector.shape_cast %26 : vector<1x8x4xf32> to vector<8x4xf32>
    %cst_12 = arith.constant dense<0.000000e+00> : vector<8x128xf32>
    %28 = tpu.matmul %27, %25, %cst_12 {dimension_numbers = #tpu.dot_dimension_numbers<[1], [0], [0], [1], [0, 0, 1, 1], [], []>} : vector<8x4xf32>, vector<4x128xf32>, vector<8x128xf32> -> vector<8x128xf32>
    %29 = arith.addf %21, %28 : vector<8x128xf32>
    %c1_i32 = arith.constant 1 : i32
    %30 = arith.addi %4, %c1_i32 : i32
    %c0_13 = arith.constant 0 : index
    %31 = arith.index_cast %30 : i32 to index
    %c0_14 = arith.constant 0 : index
    %32 = vector.load %arg5[%c0_13, %31, %c0_14] : memref<4x18x18xf32, #tpu.memory_space<vmem>>, vector<4x8x16xf32>
    %33 = vector.shape_cast %32 : vector<4x8x16xf32> to vector<4x128xf32>
    %34 = vector.extract_strided_slice %3 {offsets = [3, 0, 0], sizes = [1, 8, 4], strides = [1, 1, 1]} : vector<9x8x4xf32> to vector<1x8x4xf32>
    %35 = vector.shape_cast %34 : vector<1x8x4xf32> to vector<8x4xf32>
    %cst_15 = arith.constant dense<0.000000e+00> : vector<8x128xf32>
    %36 = tpu.matmul %35, %33, %cst_15 {dimension_numbers = #tpu.dot_dimension_numbers<[1], [0], [0], [1], [0, 0, 1, 1], [], []>} : vector<8x4xf32>, vector<4x128xf32>, vector<8x128xf32> -> vector<8x128xf32>
    %37 = arith.addf %29, %36 : vector<8x128xf32>
    %c1_i32_16 = arith.constant 1 : i32
    %38 = arith.addi %4, %c1_i32_16 : i32
    %c0_17 = arith.constant 0 : index
    %39 = arith.index_cast %38 : i32 to index
    %c1_18 = arith.constant 1 : index
    %40 = vector.load %arg5[%c0_17, %39, %c1_18] : memref<4x18x18xf32, #tpu.memory_space<vmem>>, vector<4x8x16xf32>
    %41 = vector.shape_cast %40 : vector<4x8x16xf32> to vector<4x128xf32>
    %42 = vector.extract_strided_slice %3 {offsets = [4, 0, 0], sizes = [1, 8, 4], strides = [1, 1, 1]} : vector<9x8x4xf32> to vector<1x8x4xf32>
    %43 = vector.shape_cast %42 : vector<1x8x4xf32> to vector<8x4xf32>
    %cst_19 = arith.constant dense<0.000000e+00> : vector<8x128xf32>
    %44 = tpu.matmul %43, %41, %cst_19 {dimension_numbers = #tpu.dot_dimension_numbers<[1], [0], [0], [1], [0, 0, 1, 1], [], []>} : vector<8x4xf32>, vector<4x128xf32>, vector<8x128xf32> -> vector<8x128xf32>
    %45 = arith.addf %37, %44 : vector<8x128xf32>
    %c1_i32_20 = arith.constant 1 : i32
    %46 = arith.addi %4, %c1_i32_20 : i32
    %c0_21 = arith.constant 0 : index
    %47 = arith.index_cast %46 : i32 to index
    %c2_22 = arith.constant 2 : index
    %48 = vector.load %arg5[%c0_21, %47, %c2_22] : memref<4x18x18xf32, #tpu.memory_space<vmem>>, vector<4x8x16xf32>
    %49 = vector.shape_cast %48 : vector<4x8x16xf32> to vector<4x128xf32>
    %50 = vector.extract_strided_slice %3 {offsets = [5, 0, 0], sizes = [1, 8, 4], strides = [1, 1, 1]} : vector<9x8x4xf32> to vector<1x8x4xf32>
    %51 = vector.shape_cast %50 : vector<1x8x4xf32> to vector<8x4xf32>
    %cst_23 = arith.constant dense<0.000000e+00> : vector<8x128xf32>
    %52 = tpu.matmul %51, %49, %cst_23 {dimension_numbers = #tpu.dot_dimension_numbers<[1], [0], [0], [1], [0, 0, 1, 1], [], []>} : vector<8x4xf32>, vector<4x128xf32>, vector<8x128xf32> -> vector<8x128xf32>
    %53 = arith.addf %45, %52 : vector<8x128xf32>
    %c2_i32 = arith.constant 2 : i32
    %54 = arith.addi %4, %c2_i32 : i32
    %c0_24 = arith.constant 0 : index
    %55 = arith.index_cast %54 : i32 to index
    %c0_25 = arith.constant 0 : index
    %56 = vector.load %arg5[%c0_24, %55, %c0_25] : memref<4x18x18xf32, #tpu.memory_space<vmem>>, vector<4x8x16xf32>
    %57 = vector.shape_cast %56 : vector<4x8x16xf32> to vector<4x128xf32>
    %58 = vector.extract_strided_slice %3 {offsets = [6, 0, 0], sizes = [1, 8, 4], strides = [1, 1, 1]} : vector<9x8x4xf32> to vector<1x8x4xf32>
    %59 = vector.shape_cast %58 : vector<1x8x4xf32> to vector<8x4xf32>
    %cst_26 = arith.constant dense<0.000000e+00> : vector<8x128xf32>
    %60 = tpu.matmul %59, %57, %cst_26 {dimension_numbers = #tpu.dot_dimension_numbers<[1], [0], [0], [1], [0, 0, 1, 1], [], []>} : vector<8x4xf32>, vector<4x128xf32>, vector<8x128xf32> -> vector<8x128xf32>
    %61 = arith.addf %53, %60 : vector<8x128xf32>
    %c2_i32_27 = arith.constant 2 : i32
    %62 = arith.addi %4, %c2_i32_27 : i32
    %c0_28 = arith.constant 0 : index
    %63 = arith.index_cast %62 : i32 to index
    %c1_29 = arith.constant 1 : index
    %64 = vector.load %arg5[%c0_28, %63, %c1_29] : memref<4x18x18xf32, #tpu.memory_space<vmem>>, vector<4x8x16xf32>
    %65 = vector.shape_cast %64 : vector<4x8x16xf32> to vector<4x128xf32>
    %66 = vector.extract_strided_slice %3 {offsets = [7, 0, 0], sizes = [1, 8, 4], strides = [1, 1, 1]} : vector<9x8x4xf32> to vector<1x8x4xf32>
    %67 = vector.shape_cast %66 : vector<1x8x4xf32> to vector<8x4xf32>
    %cst_30 = arith.constant dense<0.000000e+00> : vector<8x128xf32>
    %68 = tpu.matmul %67, %65, %cst_30 {dimension_numbers = #tpu.dot_dimension_numbers<[1], [0], [0], [1], [0, 0, 1, 1], [], []>} : vector<8x4xf32>, vector<4x128xf32>, vector<8x128xf32> -> vector<8x128xf32>
    %69 = arith.addf %61, %68 : vector<8x128xf32>
    %c2_i32_31 = arith.constant 2 : i32
    %70 = arith.addi %4, %c2_i32_31 : i32
    %c0_32 = arith.constant 0 : index
    %71 = arith.index_cast %70 : i32 to index
    %c2_33 = arith.constant 2 : index
    %72 = vector.load %arg5[%c0_32, %71, %c2_33] : memref<4x18x18xf32, #tpu.memory_space<vmem>>, vector<4x8x16xf32>
    %73 = vector.shape_cast %72 : vector<4x8x16xf32> to vector<4x128xf32>
    %74 = vector.extract_strided_slice %3 {offsets = [8, 0, 0], sizes = [1, 8, 4], strides = [1, 1, 1]} : vector<9x8x4xf32> to vector<1x8x4xf32>
    %75 = vector.shape_cast %74 : vector<1x8x4xf32> to vector<8x4xf32>
    %cst_34 = arith.constant dense<0.000000e+00> : vector<8x128xf32>
    %76 = tpu.matmul %75, %73, %cst_34 {dimension_numbers = #tpu.dot_dimension_numbers<[1], [0], [0], [1], [0, 0, 1, 1], [], []>} : vector<8x4xf32>, vector<4x128xf32>, vector<8x128xf32> -> vector<8x128xf32>
    %77 = arith.addf %69, %76 : vector<8x128xf32>
    %c0_35 = arith.constant 0 : index
    %c0_36 = arith.constant 0 : index
    %c0_37 = arith.constant 0 : index
    %78 = vector.load %arg4[%c0_35, %c0_36, %c0_37] : memref<1x8x128xf32, #tpu.memory_space<vmem>>, vector<1x8x128xf32>
    %79 = vector.shape_cast %78 : vector<1x8x128xf32> to vector<8x128xf32>
    %80 = vector.shape_cast %77 : vector<8x128xf32> to vector<1x8x128xf32>
    tpu.vector_store %arg4[%c0_35, %c0_36, %c0_37], %80 {strides = array<i32>} : memref<1x8x128xf32, #tpu.memory_space<vmem>>, vector<1x8x128xf32>,
    return
  }
  func.func @transform_0(%arg0: i32, %arg1: i32) -> (i32, i32, i32, i32) {
    %c0_i32 = arith.constant 0 : i32
    %c0_i32_0 = arith.constant 0 : i32
    %c0_i32_1 = arith.constant 0 : i32
    %c0_i32_2 = arith.constant 0 : i32
    return %arg0, %c0_i32, %c0_i32_0, %c0_i32_1 : i32, i32, i32, i32
  }
  func.func @transform_1(%arg0: i32, %arg1: i32) -> (i32, i32, i32) {
    %c0_i32 = arith.constant 0 : i32
    %c0_i32_0 = arith.constant 0 : i32
    %c0_i32_1 = arith.constant 0 : i32
    %c0_i32_2 = arith.constant 0 : i32
    return %c0_i32, %c0_i32_0, %c0_i32_1 : i32, i32, i32
  }
  func.func @transform_2(%arg0: i32, %arg1: i32) -> (i32, i32, i32) {
    %c0_i32 = arith.constant 0 : i32
    %c0_i32_0 = arith.constant 0 : i32
    return %arg0, %c0_i32, %arg1 : i32, i32, i32
  }
}

</mosaic_0001>

<bundles_post_ra>
// kernel: tpu_custom_call.1
= control target key start
LH: loop header
LB: loop body
LE: loop exit
PB: predicated region body
PF: predicated region fallthrough
CT: control target
= control target key end

     0   :  { %7 = vsyncpa [#allocation4], 0  ;;  %s3350_s0 = inlined_call_operand.hbm [shape: f32[2,4,16,16], index: 0, kind: input, shape index: {}]   ;;  %s3351_s1 = inlined_call_operand.vmem [shape: f32[9,8,4], index: 1, kind: input, shape index: {}]   ;;  %s3352_s2 = inlined_call_operand.hbm [shape: f32[2,8,256], index: 2, kind: output, shape index: {}]  }
   0x1   :  { %9 = vsyncpa [#allocation4 + $0x1], 0 }
   0x2   :  { %10 = vsyncpa [#allocation5], 0 }
   0x3   :  { %12 = vsyncpa [#allocation5 + $0x1], 0  ;;  %s2574_s9 = smov 0   ;;  %s2576_s10 = smov 0  }
   0x4   :  { %s2578_s11 = smov 0   ;;  %s2580_s12 = smov 0  }
   0x5   :  { %s2582_s13 = smov 0   ;;  %s2584_s14 = smov 0  }
   0x6   :  { %s2586_s15 = smov 0   ;;  %s2588_s16 = smov 0  }
   0x7   :  { %s2590_s17 = smov 0   ;;  %s2592_s18 = smov 0  }
   0x8   :  { %s2594_s19 = smov 0  }
   0x9 LB: > { %s2134_s20 = sadd.s32 4294967295, %s2538_s19   ;;  %s2135_s21 = sadd.s32 4294967294, %s2538_s19   ;;  %s2538_s19 = sphi %s2594_s19, %s18_s19   ;;  %s2534_s18 = sphi %s2592_s18, %s3373_s18   ;;  %s2530_s17 = sphi %s2590_s17, %s3372_s17   ;;  %s2526_s16 = sphi %s2588_s16, %s3371_s16   ;;  %s2522_s15 = sphi %s2586_s15, %s3370_s15   ;;  %s2518_s14 = sphi %s2584_s14, %s3369_s14   ;;  %s2514_s13 = sphi %s2582_s13, %s3368_s13   ;;  %s2510_s12 = sphi %s2580_s12, %s3367_s12   ;;  %s2506_s11 = sphi %s2578_s11, %s3366_s11   ;;  %s2502_s10 = sphi %s2576_s10, %s3365_s10   ;;  %s2498_s9 = sphi %s2574_s9, %s3364_s9  }
   0xa   : > { %s27_s22 = sadd.s32 1, %s2530_s17  ;;  %s30_s23 = sadd.s32 1, %s2534_s18 }
   0xb   : > { %p28_p0 = scmp.ge.s32.totalorder %s27_s22, 2  ;;  %s37_s24 = sadd.s32 1, %s2518_s14 }
   0xc   : > { %p44_p1 = scmp.ne.s32.totalorder %s2518_s14, %s2514_s13  ;;  %p45_p2 = scmp.eq.s32.totalorder %s2538_s19, 0 }
   0xd   : > { %s3375_s22 = smov (%p28_p0, %s27_s22), 0  ;;  %s3377_s23 = smov (!%p28_p0, %s30_s23), %s2534_s18 }
   0xe   : > { %3355 = sst [smem:[#allocation9_spill]] %s3375_s22  ;;  %p2638_p3 = por %p45_p2, %p44_p1 }
   0xf   : > { %p50_p4 = scmp.ne.s32.totalorder %s2514_s13, %s2510_s12  ;;  %p32_p5 = scmp.ge.s32.totalorder %s3377_s23, 2 }
  0x10   : > { %p51_p6 = scmp.eq.s32.totalorder %s2134_s20, 0  ;;  %s82_s26 = ssub.s32 %s2530_s17, %s3375_s22 }
  0x11   : > { %s86_s27 = sadd.s32 1, %s2506_s11  ;;  %s3379_s23 = smov (%p32_p5, %s3377_s23), 0 }
  0x12   : > { %3357 = sst [smem:[#allocation10_spill]] %s3379_s23  ;;  %p2648_p7 = por %p51_p6, %p50_p4 }
  0x13   : > { %p96_p8 = scmp.ne.s32.totalorder %s2506_s11, %s2502_s10  ;;  %s34_s29 = ssub.s32 %s2534_s18, %s3379_s23 }
  0x14   : > { %p97_p9 = scmp.eq.s32.totalorder %s2134_s20, 3  ;;  %p35_p10 = scmp.eq.s32.totalorder %s34_s29, 0 }
  0x15   : > { %s83_s30 = sor.u32 %s82_s26, %s34_s29  ;;  %p102_p13 = scmp.ne.s32.totalorder %s2502_s10, %s2498_s9 }
  0x16   : > { %p84_p11 = scmp.eq.s32.totalorder %s83_s30, 0  ;;  %p2656_p12 = por %p97_p9, %p96_p8 }
  0x17   : > { %s2661_s4 = scalar_select %p35_p10, %s2518_s14, %s37_s24  }
  0x18   : > { %s2664_s5 = scalar_select %p84_p11, %s2506_s11, %s86_s27  }
  0x19   : > { %p103_p0 = scmp.eq.s32.totalorder %s2135_s21, 3  ;;  %p2271_p1 = scmp.lt.s32.totalorder %s2538_s19, 4 }
  0x1a   : > { %s126_s7 = sand.u32 1, %s2518_s14   ;;  %s2195_s12 = sshll.u32 %s2534_s18, 10 }
  0x1b   : > { %p2669_p2 = por %p103_p0, %p102_p13  ;;  %s2138_s8 = sshll.u32 %s126_s7, 6 }
  0x1c   : > { %s136_s29 = scalar_lea.hbm %s3350_s0, %s2195_s12  ;;  %s130_s30 = scalar_lea.vmem [#allocation3], %s2138_s8 }
  0x1d   : > { %s137_s23 = sshll.u32 %s130_s30, 4  ;;  %p2680_p4 = pnand %p2271_p1, %p2638_p3  ;;  %s138_s23 = int_to_ptr.vmem [resolvable:$true] %s137_s23 }
  0x1e   : > { %p2141_p5 = scmp.ge.s32.totalorder %s2538_s19, 1  ;;  %s127_s21 = scalar_lea.sflag [#allocation4], %s126_s7 }
  0x1f   : > { %p2392_p6 = pneg %p2680_p4  ;;  %s2403_s27 = scalar_lea.vmem %s138_s23, 1024 }
  0x20   : > { %p2404_p8 = scmp.ne.s32.totalorder %s138_s23, %s2403_s27  ;;  %s2540_s22 = smov [#allocation3]  }
  0x21   : > { %s2408_s20 = sshll.u32 %s2540_s22, 4  ;;  %s2409_s20 = int_to_ptr.vmem [resolvable:$false] %s2408_s20 }
  0x22   : > { %p2406_p9 = pnand %p2404_p8, %p2392_p6  ;;  %s2410_s8 = scalar_lea.vmem %s2409_s20, 2048 }
  0x23   : > { %p2411_p11 = scmp.lt.s32.totalorder %s138_s23, %s2409_s20  ;;  %p2412_p13 = scmp.lt.s32.totalorder %s2410_s8, %s2403_s27 }
  0x24   : > { %p2407_p10 = pneg %p2406_p9 }
  0x25   : > { %p2413_p0 = por %p2412_p13, %p2411_p11 }
  0x27   : > { %p2414_p3 = pnand %p2413_p0, %p2407_p10 }
  0x29   : > { %2417 = shalt.err (!%p2414_p3)
}
  0x2a   : > { %s2541_s25 = smov 128   ;;  %s2542_s7 = smov 8  }
  0x2b   : > { %2266 = dma.hbm_to_vmem [thread:$0]  (!%p2680_p4), %s136_s29, 1024, %s138_s23, %s127_s21, %s2541_s25, %s2541_s25, %s2542_s7  }
  0x2c   : > { %p145_p1 = scmp.lt.s32.totalorder %s2538_s19, 5 }
  0x2e   : > { %p146_p6 = pnand %p2141_p5, %p145_p1 }
  0x2f   : > { %s151_s22 = sand.u32 (!%p146_p6), 1, %s2514_s13  }
  0x30   : > { %149 = sbr.rel (%p146_p6) target bundleno = 757 (0x2f5), region = 28  ;;  %s2142_s12 = sshll.u32 (!%p146_p6), %s151_s22, 6 }
  0x31   : > { %s152_s26 = scalar_lea.sflag (!%p146_p6), [#allocation4], %s151_s22  ;;  %s2693_s30 = scalar_lea.vmem (!%p146_p6), [#allocation3], %s2142_s12 }
  0x35   : > { %2489 = dma.done.wait (%p2648_p7), %s152_s26, 1024  }
  0x36   : > { %2491 = vsyncadd (%p2648_p7), %s152_s26, 4294966272  ;;  %s173_s24 = sand.u32 1, %s2502_s10   ;;  %p2144_p4 = scmp.ne.s32.totalorder %s2522_s15, 0 }
  0x37   : > { %s2702_s23 = sshll.u32 %s173_s24, 3  ;;  %s2543_s28 = smov (!%p2144_p4), 1  }
  0x38   : > { %s175_s29 = scalar_lea.vmem [#allocation6], %s2702_s23  ;;  %179 = sbr.rel (%p2144_p4) target bundleno = 190 (0xbe), region = 36 }
  0x3d   : > { %v209_v0 = vld [vmem:[%s2693_s30 + $0x10] sm:$0xff]  ;;  %v207_v1 = vld [vmem:[%s2693_s30] sm:$0xff]  ;;  %vm180_vm0 = vcmask 139264   ;;  %vm189_vm1 = vcmask 7168   ;;  %vm198_vm2 = vcmask 146568   ;;  %v210_v2 = vld [vmem:[%s2693_s30 + $0x18] sm:$0xff] }
  0x3e   : > { %227 = vrot.lane.b32.xlu1 %v209_v0, %s2543_s28  ;;  %223 = vrot.lane.b32.xlu0 %v207_v1, %s2543_s28  ;;  %v208_v3 = vld [vmem:[%s2693_s30 + $0x8] sm:$0xff]  ;;  %v2544_v4 = vmov 0.0   ;;  %v211_v6 = vld [vmem:[%s2693_s30 + $0x20] sm:$0xff]  ;;  %vm247_vm3 = vcmask 138248  }
  0x3f   : > { %181 = vst.msk [vmem:[#allocation2] sm:$0x1] %vm180_vm0, %v2544_v4  ;;  %182 = vst.msk [vmem:[#allocation2 + $0x18] sm:$0x1] %vm180_vm0, %v2544_v4  ;;  %v212_v5 = vld [vmem:[%s2693_s30 + $0x28] sm:$0xff]  ;;  %v214_v7 = vld [vmem:[%s2693_s30 + $0x38] sm:$0xff] }
  0x40   : > { %183 = vst.msk [vmem:[#allocation2 + $0x30] sm:$0x1] %vm180_vm0, %v2544_v4  ;;  %184 = vst.msk [vmem:[#allocation2 + $0x48] sm:$0x1] %vm180_vm0, %v2544_v4  ;;  %v213_v8 = vld [vmem:[%s2693_s30 + $0x30] sm:$0xff] }
  0x41   : > { %185 = vst.msk [vmem:[#allocation2 + $0x11] sm:$0x1] %vm180_vm0, %v2544_v4  ;;  %186 = vst.msk [vmem:[#allocation2 + $0x29] sm:$0x1] %vm180_vm0, %v2544_v4 }
  0x42   : > { %187 = vst.msk [vmem:[#allocation2 + $0x41] sm:$0x1] %vm180_vm0, %v2544_v4  ;;  %188 = vst.msk [vmem:[#allocation2 + $0x59] sm:$0x1] %vm180_vm0, %v2544_v4  ;;  %229 = vrot.lane.b32.xlu1 %v210_v2, %s2543_s28  ;;  %225 = vrot.lane.b32.xlu0 %v208_v3, %s2543_s28 }
  0x43   : > { %192 = vst.msk [vmem:[#allocation2 + $0x19] sm:$0xff] %vm189_vm1, %v2544_v4  ;;  %190 = vst.msk [vmem:[#allocation2 + $0x1] sm:$0xff] %vm189_vm1, %v2544_v4 }
  0x44   : > { %191 = vst.msk [vmem:[#allocation2 + $0x9] sm:$0xff] %vm189_vm1, %v2544_v4  ;;  %193 = vst.msk [vmem:[#allocation2 + $0x21] sm:$0xff] %vm189_vm1, %v2544_v4 }
  0x45   : > { %194 = vst.msk [vmem:[#allocation2 + $0x31] sm:$0xff] %vm189_vm1, %v2544_v4  ;;  %195 = vst.msk [vmem:[#allocation2 + $0x39] sm:$0xff] %vm189_vm1, %v2544_v4 }
  0x46   : > { %196 = vst.msk [vmem:[#allocation2 + $0x49] sm:$0xff] %vm189_vm1, %v2544_v4  ;;  %197 = vst.msk [vmem:[#allocation2 + $0x51] sm:$0xff] %vm189_vm1, %v2544_v4  ;;  %233 = vrot.lane.b32.xlu1 %v212_v5, %s2543_s28  ;;  %231 = vrot.lane.b32.xlu0 %v211_v6, %s2543_s28 }
  0x47   : > { %201 = vst.msk [vmem:[#allocation2 + $0x19] sm:$0xff] %vm198_vm2, %v2544_v4  ;;  %199 = vst.msk [vmem:[#allocation2 + $0x1] sm:$0xff] %vm198_vm2, %v2544_v4 }
  0x48   : > { %200 = vst.msk [vmem:[#allocation2 + $0x9] sm:$0xff] %vm198_vm2, %v2544_v4  ;;  %202 = vst.msk [vmem:[#allocation2 + $0x21] sm:$0xff] %vm198_vm2, %v2544_v4 }
  0x49   : > { %203 = vst.msk [vmem:[#allocation2 + $0x31] sm:$0xff] %vm198_vm2, %v2544_v4  ;;  %204 = vst.msk [vmem:[#allocation2 + $0x39] sm:$0xff] %vm198_vm2, %v2544_v4 }
  0x4a   : > { %205 = vst.msk [vmem:[#allocation2 + $0x49] sm:$0xff] %vm198_vm2, %v2544_v4  ;;  %206 = vst.msk [vmem:[#allocation2 + $0x51] sm:$0xff] %vm198_vm2, %v2544_v4  ;;  %237 = vrot.lane.b32.xlu1 %v214_v7, %s2543_s28  ;;  %235 = vrot.lane.b32.xlu0 %v213_v8, %s2543_s28 }
  0xb0   : > { %v228_v9 = vpop.permute.xlu1 %227  ;;  %v224_v10 = vpop.permute.xlu0 %223 }
  0xb1   : > { %250 = vst.msk [vmem:[#allocation2 + $0x19] sm:$0xff] %vm247_vm3, %v228_v9  ;;  %248 = vst.msk [vmem:[#allocation2 + $0x1] sm:$0xff] %vm247_vm3, %v224_v10 }
  0xb4   : > { %v230_v11 = vpop.permute.xlu1 %229  ;;  %v226_v12 = vpop.permute.xlu0 %225 }
  0xb5   : > { %251 = vst.msk [vmem:[#allocation2 + $0x21] sm:$0xff] %vm247_vm3, %v230_v11  ;;  %249 = vst.msk [vmem:[#allocation2 + $0x9] sm:$0xff] %vm247_vm3, %v226_v12 }
  0xb8   : > { %v234_v13 = vpop.permute.xlu1 %233  ;;  %v232_v14 = vpop.permute.xlu0 %231 }
  0xb9   : > { %253 = vst.msk [vmem:[#allocation2 + $0x39] sm:$0xff] %vm247_vm3, %v234_v13  ;;  %252 = vst.msk [vmem:[#allocation2 + $0x31] sm:$0xff] %vm247_vm3, %v232_v14 }
  0xbc   : > { %v238_v15 = vpop.permute.xlu1 %237  ;;  %v236_v16 = vpop.permute.xlu0 %235 }
  0xbd   : > { %255 = vst.msk [vmem:[#allocation2 + $0x51] sm:$0xff] %vm247_vm3, %v238_v15  ;;  %254 = vst.msk [vmem:[#allocation2 + $0x49] sm:$0xff] %vm247_vm3, %v236_v16 }
  0xbe PF: > { %s2145_s21 = sshll.u32 %s2522_s15, 3  ;;  %v2545_v19 = vmov 0.0   ;;  %s2546_s20 = smov 127   ;;  %v2548_v26 = vmov 1983009808   ;;  %v276_v28 = vlaneseq  ;;  %vm2557_vm4 = vmmov 0  }
  0xbf   : > { %s2755_s27 = scalar_lea.vmem [#allocation2], %s2145_s21  ;;  %2219 = vmatprep.subr.mxu1 %v2545_v19  ;;  %2214 = vmatprep.subr.mxu0 %v2545_v19  ;;  %s2547_s8 = smov 126   ;;  %v274_v27 = vunpack.c.l.s4 %v2548_v26  ;;  %v2549_v35 = vmov 1934713408   ;;  %vm367_vm5 = vcmask 130048   ;;  %vm369_vm6 = vcmask 261120  }
  0xc0   : > { %v277_v30 = vshrl.u32 %v276_v28, 7  ;;  %v306_v36 = vunpack.c.l.s4 %v2549_v35  ;;  %s2550_s25 = smov 64   ;;  %s2551_s7 = smov 16   ;;  %2221 = vmatprep.mubr.msk.f32.mxu1 %vm2557_vm4, %v2545_v19  ;;  %2216 = vmatprep.mubr.msk.f32.mxu0 %vm2557_vm4, %v2545_v19  ;;  %vm371_vm7 = vcmask 392192   ;;  %vm373_vm8 = vcmask 523264  }
  0xc1   : > { %v275_v29 = vunpack.c.0.s8 %v274_v27  ;;  %s2552_s22 = smov 32   ;;  %s2553_s12 = smov 112   ;;  %vm375_vm9 = vcmask 654336   ;;  %vm377_vm10 = vcmask 785408   ;;  %vm379_vm11 = vcmask 916480  }
  0xc2   : > { %v307_v45 = vunpack.c.0.s8 %v306_v36  ;;  %s2554_s26 = smov 48   ;;  %s2555_s30 = smov 80   ;;  %vm504_vm12 = vcmask 1043456   ;;  %vm500_vm13 = vcmask 31744  }
  0xc3   : > { %v2786_v31 = vsub.s32 %v275_v29, %v277_v30  ;;  %s2556_s28 = smov 96  }
  0xc4   : > { %v269_v17 = vld [vmem:[%s2755_s27 + $0x30] sm:$0xff]  ;;  %v267_v18 = vld [vmem:[%s2755_s27] sm:$0xff]  ;;  %v270_v20 = vld [vmem:[%s2755_s27 + $0x48] sm:$0xff]  ;;  %v2813_v52 = vsub.s32 %v307_v45, %v277_v30 }
  0xc5   : > { %389 = vrot.lane.b32.xlu1 %v269_v17, %s2546_s20  ;;  %385 = vrot.lane.b32.xlu0 %v267_v18, %s2546_s20  ;;  %v268_v21 = vld [vmem:[%s2755_s27 + $0x18] sm:$0xff]  ;;  %v2159_v23 = vld [vmem:[%s2755_s27 + $0x1] sm:$0xff]  ;;  %v271_v32 = vcombine.low %v267_v18, %v269_v17  ;;  %v272_v38 = vcombine.high %v267_v18, %v269_v17 }
  0xc6   : > { %v2772_v22 = vld [vmem:[%s2755_s27 + $0x19] sm:$0xff]  ;;  %v2162_v24 = vld [vmem:[%s2755_s27 + $0x49] sm:$0xff]  ;;  %v2161_v25 = vld [vmem:[%s2755_s27 + $0x31] sm:$0xff]  ;;  %v287_v33 = vcombine.low %v268_v21, %v270_v20  ;;  %v288_v39 = vcombine.high %v268_v21, %v270_v20 }
  0xc7   : > { %v2790_v34 = vld [vmem:[%s2755_s27 + $0x1a] sm:$0xff]  ;;  %v2793_v37 = vld [vmem:[%s2755_s27 + $0x2] sm:$0xff]  ;;  %v860_v40 = vcombine.low %v2159_v23, %v2161_v25  ;;  %v876_v41 = vcombine.low %v2772_v22, %v2162_v24  ;;  %v279_v42 = vrot.slane %v271_v32, %v2786_v31  ;;  %v2803_v44 = vld [vmem:[%s2755_s27 + $0x4a] sm:$0xff]  ;;  %v286_v47 = vrot.slane %v272_v38, %v2786_v31 }
  0xc8   : > { %v295_v43 = vrot.slane %v287_v33, %v2786_v31  ;;  %v2180_v46 = vld [vmem:[%s2755_s27 + $0x32] sm:$0xff]  ;;  %v302_v48 = vrot.slane %v288_v39, %v2786_v31  ;;  %v861_v56 = vcombine.high %v2159_v23, %v2161_v25  ;;  %v877_v60 = vcombine.high %v2772_v22, %v2162_v24 }
  0xc9   : > { %391 = vrot.lane.b32.xlu1 %v270_v20, %s2546_s20  ;;  %387 = vrot.lane.b32.xlu0 %v268_v21, %s2546_s20  ;;  %v868_v49 = vrot.slane %v860_v40, %v2786_v31  ;;  %v884_v50 = vrot.slane %v876_v41, %v2786_v31  ;;  %v1447_v9 = vcombine.high %v2793_v37, %v2180_v46 }
  0xca   : > { %v303_v51 = vcombine.low %v279_v42, %v295_v43  ;;  %v319_v53 = vcombine.low %v286_v47, %v302_v48  ;;  %v320_v59 = vcombine.high %v286_v47, %v302_v48  ;;  %v304_v62 = vcombine.high %v279_v42, %v295_v43 }
  0xcb   : > { %v892_v54 = vcombine.low %v868_v49, %v884_v50  ;;  %v875_v63 = vrot.slane %v861_v56, %v2786_v31  ;;  %v893_v2 = vcombine.high %v868_v49, %v884_v50  ;;  %v891_v3 = vrot.slane %v877_v60, %v2786_v31 }
  0xcc   : > { %v2820_v55 = vrot.slane %v303_v51, %v2813_v52  ;;  %v327_v57 = vrot.slane %v319_v53, %v2813_v52  ;;  %v334_v1 = vrot.slane %v320_v59, %v2813_v52  ;;  %v318_v4 = vrot.slane %v304_v62, %v2813_v52 }
  0xcd   : > { %664 = vrot.lane.b32.xlu1 %v268_v21, %s2547_s8  ;;  %662 = vrot.lane.b32.xlu0 %v267_v18, %s2547_s8  ;;  %v2826_v58 = vrot.slane %v892_v54, %v2813_v52  ;;  %v907_v6 = vrot.slane %v893_v2, %v2813_v52  ;;  %v908_v7 = vcombine.low %v875_v63, %v891_v3 }
  0xce   : > { %v335_v61 = vcombine.high %v2820_v55, %v2545_v19  ;;  %v338_v5 = vcombine.high %v334_v1, %v2545_v19  ;;  %v336_v8 = vcombine.high %v318_v4, %v2545_v19  ;;  %v1463_v10 = vcombine.high %v2790_v34, %v2803_v44 }
  0xcf   : > { %v924_v0 = vcombine.high %v2826_v58, %v2545_v19  ;;  %v909_v11 = vcombine.high %v875_v63, %v891_v3  ;;  %v925_v12 = vcombine.high %v907_v6, %v2545_v19  ;;  %v916_v13 = vrot.slane %v908_v7, %v2813_v52 }
  0xd0   : > { %v2852_v14 = vrot.slane %v1447_v9, %v2786_v31  ;;  %v2855_v15 = vrot.slane %v1463_v10, %v2786_v31  ;;  %v337_v16 = vcombine.high %v327_v57, %v2545_v19  ;;  %v1462_v18 = vcombine.low %v2790_v34, %v2803_v44 }
  0xd1   : > { %668 = vrot.lane.b32.xlu1 %v270_v20, %s2547_s8  ;;  %666 = vrot.lane.b32.xlu0 %v269_v17, %s2547_s8  ;;  %v1446_v17 = vcombine.low %v2793_v37, %v2180_v46  ;;  %v926_v21 = vcombine.high %v916_v13, %v2545_v19 }
  0xd2   : > { %v1494_v20 = vcombine.low %v2852_v14, %v2855_v15  ;;  %v1495_v28 = vcombine.high %v2852_v14, %v2855_v15 }
  0xd5   : > { %1050 = vrot.lane.b32.xlu1 %v2772_v22, %s2546_s20  ;;  %1048 = vrot.lane.b32.xlu0 %v2159_v23, %s2546_s20 }
  0xd9   : > { %1054 = vrot.lane.b32.xlu1 %v2162_v24, %s2546_s20  ;;  %1052 = vrot.lane.b32.xlu0 %v2161_v25, %s2546_s20 }
  0xdd   : > { %1250 = vrot.lane.b32.xlu1 %v2772_v22, %s2547_s8  ;;  %1248 = vrot.lane.b32.xlu0 %v2159_v23, %s2547_s8  ;;  %v923_v22 = vrot.slane %v909_v11, %v2813_v52  ;;  %v1454_v23 = vrot.slane %v1446_v17, %v2786_v31 }
  0xe1   : > { %1254 = vrot.lane.b32.xlu1 %v2162_v24, %s2547_s8  ;;  %1252 = vrot.lane.b32.xlu0 %v2161_v25, %s2547_s8  ;;  %v1470_v24 = vrot.slane %v1462_v18, %v2786_v31  ;;  %v927_v25 = vcombine.high %v923_v22, %v2545_v19 }
  0xe3   : > { %v1479_v26 = vcombine.high %v1454_v23, %v1470_v24  ;;  %v1478_v29 = vcombine.low %v1454_v23, %v1470_v24 }
  0xe5   : > { %1636 = vrot.lane.b32.xlu1 %v2790_v34, %s2546_s20  ;;  %1634 = vrot.lane.b32.xlu0 %v2793_v37, %s2546_s20  ;;  %v2875_v27 = vrot.slane %v1479_v26, %v2813_v52  ;;  %v2884_v30 = vrot.slane %v1478_v29, %v2813_v52 }
  0xe7   : > { %v1510_v32 = vcombine.high %v2884_v30, %v2545_v19 }
  0xe9   : > { %1640 = vrot.lane.b32.xlu1 %v2803_v44, %s2546_s20  ;;  %1638 = vrot.lane.b32.xlu0 %v2180_v46, %s2546_s20 }
  0xed   : > { %1836 = vrot.lane.b32.xlu1 %v2790_v34, %s2547_s8  ;;  %1834 = vrot.lane.b32.xlu0 %v2793_v37, %s2547_s8 }
  0xf1   : > { %1840 = vrot.lane.b32.xlu1 %v2803_v44, %s2547_s8  ;;  %1838 = vrot.lane.b32.xlu0 %v2180_v46, %s2547_s8  ;;  %s2028_s8 = scalar_lea.sflag [#allocation5], %s173_s24 }
  0xf5   : > { %352 = vrot.lane.b32.xlu1 %v327_v57, %s2550_s25  ;;  %340 = vrot.lane.b32.xlu0 %v335_v61, %s2551_s7 }
  0xf9   : > { %929 = vrot.lane.b32.xlu1 %v924_v0, %s2551_s7  ;;  %344 = vrot.lane.b32.xlu0 %v318_v4, %s2552_s22 }
  0xfd   : > { %364 = vrot.lane.b32.xlu1 %v338_v5, %s2553_s12  ;;  %348 = vrot.lane.b32.xlu0 %v336_v8, %s2554_s26 }
 0x101   : > { %937 = vrot.lane.b32.xlu1 %v925_v12, %s2554_s26  ;;  %356 = vrot.lane.b32.xlu0 %v337_v16, %s2555_s30 }
 0x105   : > { %945 = vrot.lane.b32.xlu1 %v926_v21, %s2555_s30  ;;  %360 = vrot.lane.b32.xlu0 %v334_v1, %s2556_s28 }
 0x109   : > { %953 = vrot.lane.b32.xlu1 %v927_v25, %s2553_s12  ;;  %933 = vrot.lane.b32.xlu0 %v907_v6, %s2552_s22 }
 0x10d   : > { %1519 = vrot.lane.b32.xlu1 %v2875_v27, %s2552_s22  ;;  %941 = vrot.lane.b32.xlu0 %v916_v13, %s2550_s25 }
 0x111   : > { %949 = vrot.lane.b32.xlu0 %v923_v22, %s2556_s28 }
 0x115   : > { %1515 = vrot.lane.b32.xlu0 %v1510_v32, %s2551_s7 }
 0x137   : > { %v390_v33 = vpop.permute.xlu1 %389  ;;  %v386_v34 = vpop.permute.xlu0 %385 }
 0x138   : > { %v397_v35 = vcombine.low %v386_v34, %v390_v33  ;;  %v398_v36 = vcombine.high %v386_v34, %v390_v33 }
 0x13a   : > { %v2895_v41 = vrot.slane %v397_v35, %v2786_v31  ;;  %v412_v42 = vrot.slane %v398_v36, %v2786_v31 }
 0x13b   : > { %v392_v37 = vpop.permute.xlu1 %391  ;;  %v388_v38 = vpop.permute.xlu0 %387 }
 0x13c   : > { %v413_v39 = vcombine.low %v388_v38, %v392_v37  ;;  %v414_v40 = vcombine.high %v388_v38, %v392_v37 }
 0x13e   : > { %v2899_v43 = vrot.slane %v413_v39, %v2786_v31  ;;  %v428_v44 = vrot.slane %v414_v40, %v2786_v31 }
 0x13f   : > { %v665_v45 = vpop.permute.xlu1 %664  ;;  %v663_v46 = vpop.permute.xlu0 %662 }
 0x140   : > { %v430_v47 = vcombine.high %v2895_v41, %v2899_v43  ;;  %v446_v48 = vcombine.high %v412_v42, %v428_v44  ;;  %v445_v49 = vcombine.low %v412_v42, %v428_v44 }
 0x142   : > { %v2905_v51 = vrot.slane %v430_v47, %v2813_v52  ;;  %v2908_v53 = vrot.slane %v446_v48, %v2813_v52  ;;  %v2923_v2 = vrot.slane %v445_v49, %v2813_v52  ;;  %v429_v48 = vcombine.low %v2895_v41, %v2899_v43 }
 0x143   : > { %v669_v50 = vpop.permute.xlu1 %668  ;;  %v667_v57 = vpop.permute.xlu0 %666 }
 0x144   : > { %v690_v54 = vcombine.low %v665_v45, %v669_v50  ;;  %v691_v56 = vcombine.high %v665_v45, %v669_v50  ;;  %v674_v59 = vcombine.low %v663_v46, %v667_v57  ;;  %v675_v60 = vcombine.high %v663_v46, %v667_v57  ;;  %470 = vrot.lane.b32.xlu1 %v2905_v51, %s2552_s22 }
 0x145   : > { %486 = vrot.lane.b32.xlu0 %v2908_v53, %s2556_s28 }
 0x146   : > { %v2915_v61 = vrot.slane %v690_v54, %v2786_v31  ;;  %v705_v62 = vrot.slane %v691_v56, %v2786_v31  ;;  %v2919_v63 = vrot.slane %v674_v59, %v2786_v31  ;;  %v689_v0 = vrot.slane %v675_v60, %v2786_v31 }
 0x147   : > { %v1051_v1 = vpop.permute.xlu1 %1050  ;;  %v1049_v3 = vpop.permute.xlu0 %1048 }
 0x148   : > { %v707_v4 = vcombine.high %v2919_v63, %v2915_v61  ;;  %478 = vrot.lane.b32.xlu1 %v2923_v2, %s2550_s25  ;;  %v722_v5 = vcombine.low %v689_v0, %v705_v62  ;;  %v723_v13 = vcombine.high %v689_v0, %v705_v62  ;;  %v706_v41 = vcombine.low %v2919_v63, %v2915_v61 }
 0x149   : > { %v2993_v62 = vrot.slane %v429_v48, %v2813_v52  ;;  %v462_v61 = vcombine.high %v2905_v51, %v2545_v19 }
 0x14a   : > { %v2930_v7 = vrot.slane %v707_v4, %v2813_v52  ;;  %v2941_v21 = vrot.slane %v722_v5, %v2813_v52  ;;  %v2950_v29 = vrot.slane %v723_v13, %v2813_v52  ;;  %v464_v13 = vcombine.high %v2908_v53, %v2545_v19 }
 0x14b   : > { %v1055_v6 = vpop.permute.xlu1 %1054  ;;  %v1053_v9 = vpop.permute.xlu0 %1052  ;;  %v461_v63 = vcombine.high %v2993_v62, %v2545_v19 }
 0x14c   : > { %v1076_v8 = vcombine.low %v1051_v1, %v1055_v6  ;;  %v1060_v10 = vcombine.low %v1049_v3, %v1053_v9  ;;  %747 = vrot.lane.b32.xlu1 %v2930_v7, %s2552_s22  ;;  %v1077_v11 = vcombine.high %v1051_v1, %v1055_v6  ;;  %v1061_v12 = vcombine.high %v1049_v3, %v1053_v9 }
 0x14d   : > { %v3007_v3 = vrot.slane %v706_v41, %v2813_v52 }
 0x14e   : > { %v2935_v16 = vrot.slane %v1076_v8, %v2786_v31  ;;  %v2938_v17 = vrot.slane %v1060_v10, %v2786_v31  ;;  %v1091_v23 = vrot.slane %v1077_v11, %v2786_v31  ;;  %v1075_v24 = vrot.slane %v1061_v12, %v2786_v31 }
 0x14f   : > { %v1251_v18 = vpop.permute.xlu1 %1250  ;;  %v1249_v22 = vpop.permute.xlu0 %1248  ;;  %v463_v8 = vcombine.high %v2923_v2, %v2545_v19  ;;  %v738_v51 = vcombine.high %v3007_v3, %v2545_v19 }
 0x150   : > { %755 = vrot.lane.b32.xlu1 %v2941_v21, %s2550_s25  ;;  %v1093_v25 = vcombine.high %v2938_v17, %v2935_v16  ;;  %v1108_v37 = vcombine.low %v1075_v24, %v1091_v23  ;;  %v1109_v49 = vcombine.high %v1075_v24, %v1091_v23  ;;  %v1092_v2 = vcombine.low %v2938_v17, %v2935_v16 }
 0x151   : > { %v740_v17 = vcombine.high %v2941_v21, %v2545_v19 }
 0x152   : > { %v2963_v44 = vrot.slane %v1093_v25, %v2813_v52  ;;  %v2976_v54 = vrot.slane %v1108_v37, %v2813_v52  ;;  %v2989_v43 = vrot.slane %v1109_v49, %v2813_v52  ;;  %v741_v49 = vcombine.high %v2950_v29, %v2545_v19 }
 0x153   : > { %v1255_v26 = vpop.permute.xlu1 %1254  ;;  %v1253_v34 = vpop.permute.xlu0 %1252 }
 0x154   : > { %v1276_v32 = vcombine.low %v1251_v18, %v1255_v26  ;;  %v1277_v33 = vcombine.high %v1251_v18, %v1255_v26  ;;  %v1260_v35 = vcombine.low %v1249_v22, %v1253_v34  ;;  %v1261_v36 = vcombine.high %v1249_v22, %v1253_v34  ;;  %763 = vrot.lane.b32.xlu1 %v2950_v29, %s2556_s28 }
 0x155   : > { %v739_v18 = vcombine.high %v2930_v7, %v2545_v19 }
 0x156   : > { %v1284_v38 = vrot.slane %v1276_v32, %v2786_v31  ;;  %v2956_v39 = vrot.slane %v1277_v33, %v2786_v31  ;;  %v1268_v40 = vrot.slane %v1260_v35, %v2786_v31  ;;  %v2960_v42 = vrot.slane %v1261_v36, %v2786_v31 }
 0x157   : > { %v2965_v45 = vpop.permute.xlu1 %1636  ;;  %v2967_v46 = vpop.permute.xlu0 %1634 }
 0x158   : > { %v1293_v47 = vcombine.high %v1268_v40, %v1284_v38  ;;  %1133 = vrot.lane.b32.xlu1 %v2963_v44, %s2552_s22  ;;  %v1308_v50 = vcombine.low %v2960_v42, %v2956_v39  ;;  %v1292_v6 = vcombine.low %v1268_v40, %v1284_v38 }
 0x15a   : > { %v1307_v56 = vrot.slane %v1293_v47, %v2813_v52  ;;  %v1316_v60 = vrot.slane %v1308_v50, %v2813_v52  ;;  %v3032_v22 = vrot.slane %v1292_v6, %v2813_v52  ;;  %v1309_v6 = vcombine.high %v2960_v42, %v2956_v39 }
 0x15b   : > { %v2979_v57 = vpop.permute.xlu1 %1640  ;;  %v2981_v59 = vpop.permute.xlu0 %1638 }
 0x15c   : > { %1141 = vrot.lane.b32.xlu1 %v2976_v54, %s2550_s25  ;;  %1333 = vrot.lane.b32.xlu0 %v1307_v56, %s2552_s22  ;;  %v1662_v11 = vcombine.low %v2965_v45, %v2979_v57  ;;  %v1646_v12 = vcombine.low %v2967_v46, %v2981_v59  ;;  %v1324_v7 = vcombine.high %v3032_v22, %v2545_v19 }
 0x15d   : > { %v1325_v36 = vcombine.high %v1307_v56, %v2545_v19  ;;  %v1326_v48 = vcombine.high %v1316_v60, %v2545_v19 }
 0x15e   : > { %v1670_v53 = vrot.slane %v1662_v11, %v2786_v31  ;;  %v1654_v26 = vrot.slane %v1646_v12, %v2786_v31  ;;  %v1323_v11 = vrot.slane %v1309_v6, %v2813_v52 }
 0x15f   : > { %v2995_v0 = vpop.permute.xlu1 %1836  ;;  %v2997_v1 = vpop.permute.xlu0 %1834 }
 0x160   : > { %1149 = vrot.lane.b32.xlu1 %v2989_v43, %s2556_s28  ;;  %1341 = vrot.lane.b32.xlu0 %v1316_v60, %s2550_s25  ;;  %v1678_v33 = vcombine.low %v1654_v26, %v1670_v53  ;;  %v256_v60 = vld [vmem:[%s3351_s1] sm:$0xff] }
 0x162   : > { %v3058_v40 = vrot.slane %v1678_v33, %v2813_v52 }
 0x163   : > { %v3009_v4 = vpop.permute.xlu1 %1840  ;;  %v3011_v5 = vpop.permute.xlu0 %1838 }
 0x164   : > { %474 = vrot.lane.b32.xlu1 %v462_v61, %s2554_s26  ;;  %466 = vrot.lane.b32.xlu0 %v461_v63, %s2551_s7  ;;  %v1710_v41 = vcombine.high %v3058_v40, %v2545_v19  ;;  %v1862_v12 = vcombine.low %v2995_v0, %v3009_v4 }
 0x167   : > { %v353_v9 = vpop.permute.xlu1 %352  ;;  %v341_v10 = vpop.permute.xlu0 %340 }
 0x168   : > { %482 = vrot.lane.b32.xlu1 %v463_v8, %s2555_s30  ;;  %743 = vrot.lane.b32.xlu0 %v738_v51, %s2551_s7  ;;  %v368_v23 = vsel %vm367_vm5, %v2820_v55, %v341_v10  ;;  %v3046_v55 = vrot.slane %v1092_v2, %v2813_v52  ;;  %v1125_v8 = vcombine.high %v2963_v44, %v2545_v19 }
 0x169   : > { %v1126_v10 = vcombine.high %v2976_v54, %v2545_v19  ;;  %v1663_v54 = vcombine.high %v2965_v45, %v2979_v57 }
 0x16a   : > { %v1124_v37 = vcombine.high %v3046_v55, %v2545_v19 }
 0x16b   : > { %v930_v24 = vpop.permute.xlu1 %929  ;;  %v345_v25 = vpop.permute.xlu0 %344 }
 0x16c   : > { %490 = vrot.lane.b32.xlu1 %v464_v13, %s2553_s12  ;;  %751 = vrot.lane.b32.xlu0 %v739_v18, %s2554_s26  ;;  %v370_v16 = vsel %vm369_vm6, %v368_v23, %v345_v25  ;;  %v956_v29 = vsel %vm367_vm5, %v2826_v58, %v930_v24  ;;  %v1502_v58 = vrot.slane %v1494_v20, %v2813_v52 }
 0x16d   : > { %v1846_v20 = vcombine.low %v2997_v1, %v3011_v5  ;;  %v1647_v24 = vcombine.high %v2967_v46, %v2981_v59  ;;  %v1327_v25 = vcombine.high %v1323_v11, %v2545_v19  ;;  %v259_v59 = vld [vmem:[%s3351_s1 + $0x18] sm:$0xff] }
 0x16e   : > { %v1512_v15 = vcombine.high %v1502_v58, %v2545_v19 }
 0x16f   : > { %v349_v32 = vpop.permute.xlu0 %348  ;;  %v365_v35 = vpop.permute.xlu1 %364  ;;  %v1854_v45 = vrot.slane %v1846_v20, %v2786_v31 }
 0x170   : > { %1329 = vrot.lane.b32.xlu1 %v1324_v7, %s2551_s7  ;;  %759 = vrot.lane.b32.xlu0 %v740_v17, %s2555_s30  ;;  %v372_v34 = vsel %vm371_vm7, %v370_v16, %v349_v32  ;;  %v1870_v16 = vrot.slane %v1862_v12, %v2786_v31  ;;  %v1511_v7 = vcombine.high %v2875_v27, %v2545_v19 }
 0x171   : > { %v374_v21 = vsel %vm373_vm8, %v372_v34, %v353_v9  ;;  %v1679_v9 = vcombine.high %v1654_v26, %v1670_v53  ;;  %v1127_v53 = vcombine.high %v2989_v43, %v2545_v19  ;;  %v1677_v32 = vrot.slane %v1663_v54, %v2786_v31 }
 0x172   : > { %v1661_v27 = vrot.slane %v1647_v24, %v2786_v31  ;;  %v1879_v34 = vcombine.high %v1854_v45, %v1870_v16 }
 0x173   : > { %v357_v38 = vpop.permute.xlu0 %356  ;;  %v938_v50 = vpop.permute.xlu1 %937  ;;  %v1693_v2 = vrot.slane %v1679_v9, %v2813_v52 }
 0x174   : > { %1337 = vrot.lane.b32.xlu1 %v1325_v36, %s2554_s26  ;;  %1129 = vrot.lane.b32.xlu0 %v1124_v37, %s2551_s7  ;;  %v376_v47 = vsel %vm375_vm9, %v374_v21, %v357_v38  ;;  %v1694_v38 = vcombine.low %v1661_v27, %v1677_v32 }
 0x175   : > { %v1711_v46 = vcombine.high %v1693_v2, %v2545_v19 }
 0x176   : > { %v1702_v14 = vrot.slane %v1694_v38, %v2813_v52 }
 0x177   : > { %v361_v56 = vpop.permute.xlu0 %360  ;;  %v946_v42 = vpop.permute.xlu1 %945 }
 0x178   : > { %1345 = vrot.lane.b32.xlu1 %v1326_v48, %s2555_s30  ;;  %767 = vrot.lane.b32.xlu0 %v741_v49, %s2553_s12  ;;  %v378_v61 = vsel %vm377_vm10, %v376_v47, %v361_v56  ;;  %v1893_v47 = vrot.slane %v1879_v34, %v2813_v52  ;;  %v1878_v48 = vcombine.low %v1854_v45, %v1870_v16 }
 0x179   : > { %v380_v63 = vsel %vm379_vm11, %v378_v61, %v365_v35  ;;  %v1509_v35 = vrot.slane %v1495_v28, %v2813_v52  ;;  %v1695_v28 = vcombine.high %v1661_v27, %v1677_v32  ;;  %v1847_v49 = vcombine.high %v2997_v1, %v3011_v5 }
 0x17a   : > { %2220 = vmatpush3.msk.msra.mxu1 %vm504_vm12, %v380_v63  ;;  %v3154_v56 = vrot.slane %v1878_v48, %v2813_v52  ;;  %v1911_v63 = vcombine.high %v1893_v47, %v2545_v19 }
 0x17b   : > { %v934_v51 = vpop.permute.xlu0 %933  ;;  %2229 = vmatprep.subr.mxu1 %v2545_v19  ;;  %2222 = vmatmul.mubr.msk.f32.vlgmr.msra.gmra.mxu1 %vm500_vm13, %v256_v60  ;;  %v954_v26 = vpop.permute.xlu1 %953  ;;  %v1861_v61 = vrot.slane %v1847_v49, %v2786_v31  ;;  %v1709_v60 = vrot.slane %v1695_v28, %v2813_v52  ;;  %v1513_v5 = vcombine.high %v1509_v35, %v2545_v19 }
 0x17c   : > { %1715 = vrot.lane.b32.xlu1 %v1710_v41, %s2551_s7  ;;  %1137 = vrot.lane.b32.xlu0 %v1125_v8, %s2554_s26  ;;  %v957_v39 = vsel %vm369_vm6, %v956_v29, %v934_v51 }
 0x17d   : > { %v958_v44 = vsel %vm371_vm7, %v957_v39, %v938_v50  ;;  %2231 = vmatprep.mubr.msk.f32.mxu1 %vm2557_vm4, %v2545_v19  ;;  %v1712_v50 = vcombine.high %v1702_v14, %v2545_v19 }
 0x17f   : > { %v942_v13 = vpop.permute.xlu0 %941  ;;  %v1520_v36 = vpop.permute.xlu1 %1519 }
 0x180   : > { %1527 = vrot.lane.b32.xlu1 %v1502_v58, %s2550_s25  ;;  %1145 = vrot.lane.b32.xlu0 %v1126_v10, %s2555_s30  ;;  %v959_v18 = vsel %vm373_vm8, %v958_v44, %v942_v13 }
 0x181   : > { %v960_v23 = vsel %vm375_vm9, %v959_v18, %v946_v42 }
 0x183   : > { %v950_v17 = vpop.permute.xlu0 %949 }
 0x184   : > { %1353 = vrot.lane.b32.xlu1 %v1327_v25, %s2553_s12  ;;  %1153 = vrot.lane.b32.xlu0 %v1127_v53, %s2553_s12  ;;  %v961_v57 = vsel %vm377_vm10, %v960_v23, %v950_v17 }
 0x185   : > { %v962_v43 = vsel %vm379_vm11, %v961_v57, %v954_v26 }
 0x186   : > { %2230 = vmatpush3.msk.msra.mxu1 %vm504_vm12, %v962_v43 }
 0x187   : > { %v1516_v33 = vpop.permute.xlu0 %1515  ;;  %2239 = vmatprep.subr.mxu1 %v2545_v19  ;;  %2232 = vmatmul.mubr.msk.f32.vlgmr.msra.gmra.mxu1 %vm500_vm13, %v259_v59 }
 0x188   : > { %1723 = vrot.lane.b32.xlu1 %v1711_v46, %s2554_s26  ;;  %1523 = vrot.lane.b32.xlu0 %v1511_v7, %s2554_s26  ;;  %v1542_v37 = vsel %vm367_vm5, %v2884_v30, %v1516_v33  ;;  %v1863_v30 = vcombine.high %v2995_v0, %v3009_v4  ;;  %v1910_v0 = vcombine.high %v3154_v56, %v2545_v19  ;;  %v257_v46 = vld [vmem:[%s3351_s1 + $0x8] sm:$0xff] }
 0x189   : > { %v3137_v21 = vsel %vm369_vm6, %v1542_v37, %v1520_v36  ;;  %2241 = vmatprep.mubr.msk.f32.mxu1 %vm2557_vm4, %v2545_v19  ;;  %v1713_v4 = vcombine.high %v1709_v60, %v2545_v19 }
 0x18a   : > { %v1877_v41 = vrot.slane %v1863_v30, %v2786_v31 }
 0x18c   : > { %1535 = vrot.lane.b32.xlu1 %v1509_v35, %s2556_s28  ;;  %1349 = vrot.lane.b32.xlu0 %v1323_v11, %s2556_s28  ;;  %v1895_v1 = vcombine.high %v1861_v61, %v1877_v41  ;;  %v1894_v29 = vcombine.low %v1861_v61, %v1877_v41 }
 0x18e   : > { %v1909_v31 = vrot.slane %v1895_v1, %v2813_v52  ;;  %v1902_v6 = vrot.slane %v1894_v29, %v2813_v52 }
 0x190   : > { %1919 = vrot.lane.b32.xlu1 %v1893_v47, %s2552_s22  ;;  %1719 = vrot.lane.b32.xlu0 %v1693_v2, %s2552_s22  ;;  %v1912_v8 = vcombine.high %v1902_v6, %v2545_v19  ;;  %v1913_v51 = vcombine.high %v1909_v31, %v2545_v19  ;;  %v258_v47 = vld [vmem:[%s3351_s1 + $0x10] sm:$0xff] }
 0x194   : > { %1731 = vrot.lane.b32.xlu1 %v1712_v50, %s2555_s30  ;;  %1531 = vrot.lane.b32.xlu0 %v1512_v15, %s2555_s30 }
 0x198   : > { %1735 = vrot.lane.b32.xlu1 %v1709_v60, %s2556_s28  ;;  %1915 = vrot.lane.b32.xlu0 %v1910_v0, %s2551_s7 }
 0x19c   : > { %1739 = vrot.lane.b32.xlu1 %v1713_v4, %s2553_s12  ;;  %1727 = vrot.lane.b32.xlu0 %v1702_v14, %s2550_s25 }
 0x1a0   : > { %1935 = vrot.lane.b32.xlu1 %v1909_v31, %s2556_s28  ;;  %1539 = vrot.lane.b32.xlu0 %v1513_v5, %s2553_s12  ;;  %v260_v5 = vld [vmem:[%s3351_s1 + $0x20] sm:$0xff]  ;;  %s2043_s28 = sshll.u32 %s175_s29, 4  ;;  %s2044_s28 = int_to_ptr.vmem [resolvable:$true] %s2043_s28 }
 0x1a4   : > { %1923 = vrot.lane.b32.xlu0 %v1911_v63, %s2554_s26 }
 0x1a8   : > { %1927 = vrot.lane.b32.xlu0 %v1902_v6, %s2550_s25 }
 0x1ac   : > { %1931 = vrot.lane.b32.xlu0 %v1912_v8, %s2555_s30 }
 0x1b0   : > { %1939 = vrot.lane.b32.xlu0 %v1913_v51, %s2553_s12  ;;  %s2191_s12 = sshll.u32 %s2526_s16, 1  ;;  %s2418_s16 = scalar_lea.vmem %s2044_s28, 128 }
 0x1b1   : > { %s2039_s26 = sadd.s32 %s2522_s15, %s2191_s12  ;;  %p2419_p7 = scmp.ne.s32.totalorder %s2044_s28, %s2418_s16 }
 0x1b2   : > { %s2192_s30 = sshll.u32 %s2039_s26, 7  ;;  %s2558_s15 = smov [#allocation6]  }
 0x1b3   : > { %s3291_s20 = scalar_lea.hbm %s3352_s2, %s2192_s30  ;;  %p2420_p5 = pnand %p2419_p7, %p2656_p12 }
 0x1b4   : > { %s2422_s25 = sshll.u32 %s2558_s15, 4  ;;  %s2423_s25 = int_to_ptr.vmem [resolvable:$false] %s2422_s25 }
 0x1b5   : > { %p2421_p8 = pneg %p2420_p5  ;;  %s2424_s7 = scalar_lea.vmem %s2423_s25, 256 }
 0x1b6   : > { %v471_v9 = vpop.permute.xlu1 %470  ;;  %p2425_p9 = scmp.lt.s32.totalorder %s2044_s28, %s2423_s25  ;;  %p2426_p10 = scmp.lt.s32.totalorder %s2424_s7, %s2418_s16 }
 0x1b7   : > { %v487_v10 = vpop.permute.xlu0 %486 }
 0x1b8   : > { %p2427_p11 = por %p2426_p10, %p2425_p9 }
 0x1ba   : > { %v479_v58 = vpop.permute.xlu1 %478  ;;  %p2428_p13 = pnand %p2427_p11, %p2421_p8 }
 0x1be   : > { %v748_v39 = vpop.permute.xlu1 %747 }
 0x1c2   : > { %v756_v42 = vpop.permute.xlu1 %755 }
 0x1c6   : > { %v764_v44 = vpop.permute.xlu1 %763 }
 0x1ca   : > { %v1134_v11 = vpop.permute.xlu1 %1133 }
 0x1ce   : > { %v1142_v12 = vpop.permute.xlu1 %1141  ;;  %v1334_v13 = vpop.permute.xlu0 %1333 }
 0x1d2   : > { %v1150_v52 = vpop.permute.xlu1 %1149  ;;  %v1342_v20 = vpop.permute.xlu0 %1341 }
 0x1d6   : > { %v475_v2 = vpop.permute.xlu1 %474  ;;  %v467_v18 = vpop.permute.xlu0 %466 }
 0x1d7   : > { %v493_v23 = vsel %vm367_vm5, %v2993_v62, %v467_v18 }
 0x1d8   : > { %v494_v54 = vsel %vm369_vm6, %v493_v23, %v471_v9 }
 0x1d9   : > { %v495_v24 = vsel %vm371_vm7, %v494_v54, %v475_v2 }
 0x1da   : > { %v483_v25 = vpop.permute.xlu1 %482  ;;  %v496_v53 = vsel %vm373_vm8, %v495_v24, %v479_v58  ;;  %v744_v26 = vpop.permute.xlu0 %743 }
 0x1db   : > { %v497_v16 = vsel %vm375_vm9, %v496_v53, %v483_v25  ;;  %v770_v62 = vsel %vm367_vm5, %v3007_v3, %v744_v26 }
 0x1dc   : > { %v498_v45 = vsel %vm377_vm10, %v497_v16, %v487_v10  ;;  %v771_v59 = vsel %vm369_vm6, %v770_v62, %v748_v39  ;;  %v262_v62 = vld [vmem:[%s3351_s1 + $0x30] sm:$0xff] }
 0x1de   : > { %v491_v7 = vpop.permute.xlu1 %490  ;;  %v752_v17 = vpop.permute.xlu0 %751 }
 0x1df   : > { %v499_v57 = vsel %vm379_vm11, %v498_v45, %v491_v7  ;;  %v772_v27 = vsel %vm371_vm7, %v771_v59, %v752_v17 }
 0x1e0   : > { %2215 = vmatpush3.msk.msra.mxu0 %vm504_vm12, %v499_v57  ;;  %v773_v33 = vsel %vm373_vm8, %v772_v27, %v756_v42  ;;  %v261_v42 = vld [vmem:[%s3351_s1 + $0x28] sm:$0xff] }
 0x1e1   : > { %2224 = vmatprep.subr.mxu0 %v2545_v19  ;;  %2217 = vmatmul.mubr.msk.f32.vlgmr.msra.gmra.mxu0 %vm500_vm13, %v257_v46 }
 0x1e2   : > { %v1330_v43 = vpop.permute.xlu1 %1329  ;;  %v760_v32 = vpop.permute.xlu0 %759  ;;  %2226 = vmatprep.mubr.msk.f32.mxu0 %vm2557_vm4, %v2545_v19 }
 0x1e3   : > { %v774_v35 = vsel %vm375_vm9, %v773_v33, %v760_v32  ;;  %v1356_v60 = vsel %vm367_vm5, %v3032_v22, %v1330_v43 }
 0x1e4   : > { %v775_v37 = vsel %vm377_vm10, %v774_v35, %v764_v44  ;;  %v1357_v29 = vsel %vm369_vm6, %v1356_v60, %v1334_v13 }
 0x1e6   : > { %v1338_v3 = vpop.permute.xlu1 %1337  ;;  %v1130_v34 = vpop.permute.xlu0 %1129 }
 0x1e7   : > { %v1156_v48 = vsel %vm367_vm5, %v3046_v55, %v1130_v34  ;;  %v1358_v22 = vsel %vm371_vm7, %v1357_v29, %v1338_v3 }
 0x1e8   : > { %v1157_v28 = vsel %vm369_vm6, %v1156_v48, %v1134_v11  ;;  %v1359_v8 = vsel %vm373_vm8, %v1358_v22, %v1342_v20 }
 0x1ea   : > { %v1346_v36 = vpop.permute.xlu1 %1345  ;;  %v768_v38 = vpop.permute.xlu0 %767 }
 0x1eb   : > { %v776_v14 = vsel %vm379_vm11, %v775_v37, %v768_v38  ;;  %v1360_v51 = vsel %vm375_vm9, %v1359_v8, %v1346_v36 }
 0x1ec   : > { %2225 = vmatpush3.msk.msra.mxu0 %vm504_vm12, %v776_v14 }
 0x1ed   : > { %2234 = vmatprep.subr.mxu0 %v2545_v19  ;;  %2227 = vmatmul.mubr.msk.f32.vlgmr.msra.gmra.mxu0 %vm500_vm13, %v258_v47 }
 0x1ee   : > { %v1716_v15 = vpop.permute.xlu1 %1715  ;;  %v1138_v30 = vpop.permute.xlu0 %1137  ;;  %2236 = vmatprep.mubr.msk.f32.mxu0 %vm2557_vm4, %v2545_v19 }
 0x1ef   : > { %v1158_v49 = vsel %vm371_vm7, %v1157_v28, %v1138_v30 }
 0x1f0   : > { %v1159_v55 = vsel %vm373_vm8, %v1158_v49, %v1142_v12 }
 0x1f2   : > { %v1528_v50 = vpop.permute.xlu1 %1527  ;;  %v1146_v41 = vpop.permute.xlu0 %1145 }
 0x1f3   : > { %v1160_v61 = vsel %vm375_vm9, %v1159_v55, %v1146_v41 }
 0x1f4   : > { %v1161_v1 = vsel %vm377_vm10, %v1160_v61, %v1150_v52  ;;  %v1742_v52 = vsel %vm367_vm5, %v3058_v40, %v1716_v15 }
 0x1f6   : > { %v1354_v0 = vpop.permute.xlu1 %1353  ;;  %v1154_v4 = vpop.permute.xlu0 %1153 }
 0x1f7   : > { %v1162_v31 = vsel %vm379_vm11, %v1161_v1, %v1154_v4 }
 0x1f8   : > { %2235 = vmatpush3.msk.msra.mxu0 %vm504_vm12, %v1162_v31 }
 0x1f9   : > { %2244 = vmatprep.subr.mxu0 %v2545_v19  ;;  %2237 = vmatmul.mubr.msk.f32.vlgmr.msra.gmra.mxu0 %vm500_vm13, %v260_v5 }
 0x1fa   : > { %v1724_v63 = vpop.permute.xlu1 %1723  ;;  %v1524_v6 = vpop.permute.xlu0 %1523  ;;  %2246 = vmatprep.mubr.msk.f32.mxu0 %vm2557_vm4, %v2545_v19 }
 0x1fb   : > { %v1544_v2 = vsel %vm371_vm7, %v3137_v21, %v1524_v6  ;;  %v263_v21 = vld [vmem:[%s3351_s1 + $0x38] sm:$0xff] }
 0x1fc   : > { %v1545_v54 = vsel %vm373_vm8, %v1544_v2, %v1528_v50 }
 0x1fe   : > { %v1536_v9 = vpop.permute.xlu1 %1535  ;;  %v1350_v58 = vpop.permute.xlu0 %1349 }
 0x1ff   : > { %v1361_v39 = vsel %vm377_vm10, %v1360_v51, %v1350_v58 }
 0x200   : > { %v1362_v44 = vsel %vm379_vm11, %v1361_v39, %v1354_v0 }
 0x201   : > { %2240 = vmatpush3.msk.msra.mxu1 %vm504_vm12, %v1362_v44 }
 0x202   : > { %v1920_v10 = vpop.permute.xlu1 %1919  ;;  %v1720_v11 = vpop.permute.xlu0 %1719  ;;  %2249 = vmatprep.subr.mxu1 %v2545_v19  ;;  %2242 = vmatmul.mubr.msk.f32.vlgmr.msra.gmra.mxu1 %vm500_vm13, %v261_v42 }
 0x203   : > { %2251 = vmatprep.mubr.msk.f32.mxu1 %vm2557_vm4, %v2545_v19  ;;  %v1743_v18 = vsel %vm369_vm6, %v1742_v52, %v1720_v11 }
 0x204   : > { %v1744_v24 = vsel %vm371_vm7, %v1743_v18, %v1724_v63 }
 0x206   : > { %v1732_v12 = vpop.permute.xlu1 %1731  ;;  %v1532_v13 = vpop.permute.xlu0 %1531 }
 0x207   : > { %v1546_v53 = vsel %vm375_vm9, %v1545_v54, %v1532_v13 }
 0x208   : > { %v1547_v17 = vsel %vm377_vm10, %v1546_v53, %v1536_v9 }
 0x20a   : > { %v1916_v20 = vpop.permute.xlu0 %1915  ;;  %v1736_v23 = vpop.permute.xlu1 %1735 }
 0x20b   : > { %v1942_v43 = vsel %vm367_vm5, %v3154_v56, %v1916_v20 }
 0x20c   : > { %v1943_v27 = vsel %vm369_vm6, %v1942_v43, %v1920_v10 }
 0x20e   : > { %v1728_v25 = vpop.permute.xlu0 %1727  ;;  %v1740_v7 = vpop.permute.xlu1 %1739 }
 0x20f   : > { %v1745_v26 = vsel %vm373_vm8, %v1744_v24, %v1728_v25 }
 0x210   : > { %v1746_v16 = vsel %vm375_vm9, %v1745_v26, %v1732_v12 }
 0x211   : > { %v1747_v40 = vsel %vm377_vm10, %v1746_v16, %v1736_v23 }
 0x212   : > { %v1540_v45 = vpop.permute.xlu0 %1539  ;;  %v1748_v46 = vsel %vm379_vm11, %v1747_v40, %v1740_v7  ;;  %v1936_v36 = vpop.permute.xlu1 %1935 }
 0x213   : > { %v1548_v57 = vsel %vm379_vm11, %v1547_v17, %v1540_v45  ;;  %2250 = vmatpush3.msk.msra.mxu1 %vm504_vm12, %v1748_v46 }
 0x214   : > { %2245 = vmatpush3.msk.msra.mxu0 %vm504_vm12, %v1548_v57  ;;  %2252 = vmatmul.mubr.msk.f32.vlgmr.msra.gmra.mxu1 %vm500_vm13, %v263_v21 }
 0x215   : > { %2247 = vmatmul.mubr.msk.f32.vlgmr.msra.gmra.mxu0 %vm500_vm13, %v262_v62  ;;  %2254 = vmatprep.subr.mxu0 %v2545_v19 }
 0x216   : > { %v1924_v59 = vpop.permute.xlu0 %1923  ;;  %2256 = vmatprep.mubr.msk.f32.mxu0 %vm2557_vm4, %v2545_v19  ;;  %v264_v19 = vld [vmem:[%s3351_s1 + $0x40] sm:$0xff] }
 0x217   : > { %v1944_v33 = vsel %vm371_vm7, %v1943_v27, %v1924_v59 }
 0x21a   : > { %v1928_v32 = vpop.permute.xlu0 %1927 }
 0x21b   : > { %v1945_v3 = vsel %vm373_vm8, %v1944_v33, %v1928_v32 }
 0x21e   : > { %v1932_v34 = vpop.permute.xlu0 %1931 }
 0x21f   : > { %v1946_v35 = vsel %vm375_vm9, %v1945_v3, %v1932_v34 }
 0x220   : > { %v1947_v37 = vsel %vm377_vm10, %v1946_v35, %v1936_v36 }
 0x222   : > { %v1940_v38 = vpop.permute.xlu0 %1939 }
 0x223   : > { %v1948_v56 = vsel %vm379_vm11, %v1947_v37, %v1940_v38 }
 0x224   : > { %2255 = vmatpush3.msk.msra.mxu0 %vm504_vm12, %v1948_v56 }
 0x225   : > { %2257 = vmatmul.mubr.msk.f32.vlgmr.msra.gmra.mxu0 %vm500_vm13, %v264_v19 }
 0x23b   : > { %v650_v47 = vpop.f32.mrf.mxu1 }
 0x23d   : > { %v2223_v48 = vpop.f32.mrf.mxu1 }
 0x247   : > { %v1035_v14 = vpop.f32.mrf.mxu1 }
 0x249   : > { %v2233_v15 = vpop.f32.mrf.mxu1 }
 0x2a1   : > { %v574_v28 = vpop.f32.mrf.mxu0 }
 0x2a2   : > { %v651_v0 = vadd.f32 %v650_v47, %v574_v28 }
 0x2a3   : > { %v2218_v30 = vpop.f32.mrf.mxu0 }
 0x2ad   : > { %v849_v49 = vpop.f32.mrf.mxu0 }
 0x2ae   : > { %v853_v1 = vadd.f32 %v849_v49, %v651_v0 }
 0x2af   : > { %v2228_v50 = vpop.f32.mrf.mxu0 }
 0x2b0   : > { %v1039_v4 = vadd.f32 %v1035_v14, %v853_v1 }
 0x2b9   : > { %v1235_v55 = vpop.f32.mrf.mxu0 }
 0x2ba   : > { %v1239_v63 = vadd.f32 %v1235_v55, %v1039_v4 }
 0x2bb   : > { %v2238_v41 = vpop.f32.mrf.mxu0 }
 0x2c2   : > { %v1435_v61 = vpop.f32.mrf.mxu1 }
 0x2c3   : > { %v1439_v6 = vadd.f32 %v1435_v61, %v1239_v63 }
 0x2c4   : > { %v2243_v60 = vpop.f32.mrf.mxu1 }
 0x2d4   : > { %v1821_v5 = vpop.f32.mrf.mxu1 }
 0x2d5   : > { %v1621_v31 = vpop.f32.mrf.mxu0 }
 0x2d6   : > { %v2253_v29 = vpop.f32.mrf.mxu1  ;;  %v1625_v8 = vadd.f32 %v1621_v31, %v1439_v6 }
 0x2d7   : > { %v2248_v22 = vpop.f32.mrf.mxu0 }
 0x2d8   : > { %v1825_v51 = vadd.f32 %v1821_v5, %v1625_v8 }
 0x2e5   : > { %v2021_v9 = vpop.f32.mrf.mxu0 }
 0x2e6   : > { %v2025_v58 = vadd.f32 %v2021_v9, %v1825_v51 }
 0x2e7   : > { %v2258_v39 = vpop.f32.mrf.mxu0 }
 0x2e8   : > { %2026 = vst [vmem:[%s175_s29] sm:$0xff] %v2025_v58 }
 0x2e9   : > { %2431 = shalt.err (!%p2428_p13)
}
 0x2ea   : > { %s2432_s23 = scalar_lea.hbm %s3291_s20, 128  ;;  %s2436_s22 = scalar_lea.hbm %s3352_s2, 512 }
 0x2eb   : > { %p2433_p0 = scmp.ne.s32.totalorder %s3291_s20, %s2432_s23  ;;  %p2437_p6 = scmp.lt.s32.totalorder %s3291_s20, %s3352_s2 }
 0x2ec   : > { %p2438_p4 = scmp.lt.s32.totalorder %s2436_s22, %s2432_s23 }
 0x2ed   : > { %p2434_p3 = pnand %p2433_p0, %p2656_p12 }
 0x2ee   : > { %p2439_p7 = por %p2438_p4, %p2437_p6 }
 0x2ef   : > { %p2435_p1 = pneg %p2434_p3 }
 0x2f1   : > { %p2440_p5 = pnand %p2439_p7, %p2435_p1 }
 0x2f3   : > { %2443 = shalt.err (!%p2440_p5)
}
 0x2f4   : > { %2261 = dma.vmem_to_hbm [thread:$0]  (%p2656_p12), %s2044_s28, 128, %s3291_s20, %s2028_s8  }
 0x2f5 PF: > { %p2272_p8 = scmp.ge.s32.totalorder %s2538_s19, 2  ;;  %s2055_s30 = sand.u32 1, %s2498_s9  }
 0x2f6   : > { %s2056_s21 = scalar_lea.sflag [#allocation5], %s2055_s30 }
 0x2f7   : > { %p2268_p9 = pnand %p2272_p8, %p2669_p2 }
 0x2f9   : > { %p2269_p10 = pneg %p2268_p9 }
 0x2fb   : > { %2493 = dma.done.wait (%p2269_p10), %s2056_s21, 128  }
 0x2fc   : > { %2495 = vsyncadd (%p2269_p10), %s2056_s21, 4294967168  ;;  %s18_s19 = sadd.s32 1, %s2538_s19   ;;  %s3362_s3 = sld [smem:[#allocation9_spill]] }
 0x2fd   : > { %p15_p11 = scmp.ge.s32.totalorder %s18_s19, 6   ;;  %s3363_s28 = sld [smem:[#allocation10_spill]] }
 0x2fe   : > { %s3364_s9 = smov %s2502_s10  ;;  %s3365_s10 = smov %s2506_s11 }
 0x2ff   : > { %s3366_s11 = smov %s2664_s5  ;;  %s3367_s12 = smov %s2514_s13 }
 0x300   : > { %s3368_s13 = smov %s2518_s14  ;;  %s3369_s14 = smov %s2661_s4 }
 0x301   : > { %s3370_s15 = smov %s2530_s17  ;;  %s3371_s16 = smov %s2534_s18 }
 0x302   : > { %s3372_s17 = smov %s3362_s3  ;;  %17 = sbr.rel (!%p15_p11) target bundleno = 9 (0x9), region = 80 }
 0x303   : > { %s3373_s18 = smov %s3363_s28 }
 0x307   :  { %2061 = vsyncpa [#allocation4], 1 }
 0x308   :  { %2063 = vsyncpa [#allocation4 + $0x1], 1 }
 0x309   :  { %2064 = vsyncpa [#allocation5], 1 }
 0x30a   :  { %2066 = vsyncpa [#allocation5 + $0x1], 1 }

</bundles_post_ra>
